<compile_context>
chip_gen: v6e
topology: v6e:2x2x1
jax: 0.10.0
libtpu: 0.0.40
codegen_flags: <defaults>
</compile_context>

<pallas_src>
import functools

import jax
import jax.numpy as jnp
from jax.experimental import pallas as pl
from jax.experimental.pallas import tpu as pltpu


def _focal_kernel(*refs, gamma, gpow, hw, t_l, need_mask, has_alpha, exp_bf16):
    if has_alpha:
        t_ref, x_ref, a_ref, o_ref = refs
    else:
        t_ref, x_ref, o_ref = refs

    x = x_ref[0].astype(jnp.float32)          # (C, T)  classes on sublanes
    t = t_ref[0].astype(jnp.int32)            # (1, T)  target class per pixel

    # numerically-stable log-softmax over the class (sublane) axis
    m = jnp.max(x, axis=0, keepdims=True)                          # (1, T)
    z = x - m                                                      # (C, T)
    if exp_bf16:   # opt-in: bf16 EUP exp (v6e/v7x only), f32 accumulation
        ez = jnp.exp(z.astype(jnp.bfloat16)).astype(jnp.float32)
    else:
        ez = jnp.exp(z)
    lse = jnp.log(jnp.sum(ez, axis=0, keepdims=True))              # (1, T)

    # gather z at the target class: (C,1) iota column vs (1,T) targets —
    # avoids materializing a full (C,T) class iota.
    cls = jax.lax.broadcasted_iota(jnp.int32, (x.shape[0], 1), 0)  # (C, 1)
    onehot = cls == t                                              # (C, T)
    zt = jnp.sum(jnp.where(onehot, z, 0.0), axis=0, keepdims=True)
    logpt = zt - lse                                               # (1, T)
    pt = jnp.exp(logpt)

    if has_alpha:  # traced only when alpha is provided (dead work elided)
        a = a_ref[...].astype(jnp.float32)                         # (C, 1)
        at = jnp.sum(jnp.where(onehot, a, 0.0), axis=0, keepdims=True)
        logpt = logpt * at

    u = 1.0 - pt
    if gpow is not None:          # integer gamma: repeated VPU multiplies
        if gpow == 0:
            w = jnp.ones_like(u)
        else:
            w = u
            for _ in range(gpow - 1):
                w = w * u
    else:                         # non-integer gamma: pow (EUP)
        w = u ** jnp.float32(gamma)

    loss = -w * logpt                                              # (1, T)

    def _store(vals):
        # per-tile partial sum, broadcast across one lane-dense vreg row
        s = jnp.sum(vals, axis=1, keepdims=True)                   # (1, 1)
        o_ref[...] = jnp.broadcast_to(s.reshape(1, 1, 1, 1), (1, 1, 1, 128))

    if need_mask:
        # NOTE: only the LAST pixel tile reads OOB lanes (garbage logits /
        # targets); correctness relies on the where-REPLACEMENT below so
        # NaN/Inf can never leak into the lane reduction.
        ll = pl.program_id(1)
        last = pl.num_programs(1) - 1

        @pl.when(ll != last)
        def _():
            _store(loss)

        @pl.when(ll == last)
        def _():
            lane = jax.lax.broadcasted_iota(jnp.int32, loss.shape, 1)
            _store(jnp.where(ll * t_l + lane < hw, loss, 0.0))
    else:
        _store(loss)


def _pick_lane_tile(hw, c, budget_bytes=6 << 20, t_max=131072):
    """Largest multiple-of-128 pixel tile whose f32 compute slab fits the budget."""
    t = budget_bytes // max(1, c * 4)
    t = max(128, min(int(t), t_max))
    t = (t // 128) * 128
    if hw <= t:
        return hw            # single full-width block, no lane masking needed
    return t


def _vmem_limit_bytes(c, t_l, in_itemsize):
    in_slab = c * t_l * in_itemsize          # logits tile in its HBM dtype
    f32_slab = c * t_l * 4                   # in-kernel f32 compute slab
    tgt_slab = t_l * 4
    # 2x double-buffered logits + targets, a few (C,T) f32 temporaries for the
    # elementwise chain, tiny per-tile output, plus margin.  Clamp to 48 MiB so
    # the same tiling stays inside v7x's 64 MiB physical VMEM per TensorCore.
    need = 2 * (in_slab + tgt_slab) + 4 * f32_slab + (2 << 20)
    return int(min(max(need, 32 << 20), 48 << 20))


def focal_loss(x, target, *, gamma=2.0, alpha=None, size_average=True,
               lane_tile=None, exp_in_bf16=False):
    # ---- layout: mirror the module's flatten, but WITHOUT the transpose ----
    if x.ndim > 2:
        n, c = x.shape[0], x.shape[1]
        hw = 1
        for d in x.shape[2:]:
            hw *= d
        x3 = x.reshape(n, c, hw)                        # free reshape (NCHW order)
        tgt = target.reshape(n, 1, hw)
    else:
        # (M, C) inputs: classes onto sublanes, rows onto lanes (cold path).
        # TODO(synk): add a classes-on-lanes kernel variant to avoid this wrapper
        # transpose (extra HBM round-trip) if the 2D path ever becomes hot.
        m_rows, c = x.shape
        n, hw = 1, m_rows
        x3 = jnp.transpose(x).reshape(1, c, m_rows)
        tgt = target.reshape(1, 1, m_rows)

    # keep narrow integer target dtypes (less HBM traffic); upcast in-kernel
    if not (jnp.issubdtype(tgt.dtype, jnp.integer)
            and jnp.dtype(tgt.dtype).itemsize <= 4):
        tgt = tgt.astype(jnp.int32)

    total = n * hw
    inv_count = (1.0 / total) if size_average else 1.0

    itemsize = jnp.dtype(x.dtype).itemsize
    if lane_tile is not None:
        # guard: a user-provided tile must be a multiple of 128 or cover hw
        t_l = int(lane_tile)
        t_l = hw if t_l >= hw else max(128, (t_l // 128) * 128)
    else:
        t_l = _pick_lane_tile(hw, c)
    num_l = pl.cdiv(hw, t_l)
    need_mask = (hw % t_l) != 0

    g = float(gamma)
    gpow = int(g) if (g.is_integer() and 0 <= g <= 8) else None

    has_alpha = alpha is not None
    inputs = [tgt, x3]
    in_specs = [
        pl.BlockSpec((1, 1, t_l), lambda nn, ll: (nn, 0, ll)),   # targets (lane-dense)
        pl.BlockSpec((1, c, t_l), lambda nn, ll: (nn, 0, ll)),   # logits
    ]
    if has_alpha:
        inputs.append(jnp.asarray(alpha, jnp.float32).reshape(c, 1))
        in_specs.append(pl.BlockSpec((c, 1), lambda nn, ll: (0, 0)))

    kernel = functools.partial(
        _focal_kernel, gamma=g, gpow=gpow, hw=hw, t_l=t_l,
        need_mask=need_mask, has_alpha=has_alpha, exp_bf16=exp_in_bf16)

    cost = pl.CostEstimate(
        flops=int(10 * n * c * hw),
        transcendentals=int(n * hw * (c + 2)),
        bytes_accessed=int(x3.size * itemsize
                           + tgt.size * jnp.dtype(tgt.dtype).itemsize
                           + n * num_l * 128 * 4),
    )

    partials = pl.pallas_call(
        kernel,
        out_shape=jax.ShapeDtypeStruct((n, num_l, 1, 128), jnp.float32),
        grid_spec=pltpu.PrefetchScalarGridSpec(
            num_scalar_prefetch=0,
            grid=(n, num_l),
            in_specs=in_specs,
            # each (image, pixel-tile) grid cell owns its own tiny lane-dense
            # partial-sum block -> both grid axes can be "parallel" (v7x megacore)
            out_specs=pl.BlockSpec((1, 1, 1, 128), lambda nn, ll: (nn, ll, 0, 0)),
        ),
        compiler_params=pltpu.CompilerParams(
            dimension_semantics=("parallel", "parallel"),
            vmem_limit_bytes=_vmem_limit_bytes(c, t_l, itemsize)),
        cost_estimate=cost,
    )(*inputs)

    # final reduction + mean/sum scaling over the tiny (N, num_tiles) partials
    return jnp.sum(partials[:, :, 0, 0]) * inv_count


def _focal_loss_ref(x, target, gamma=2.0, alpha=None, size_average=True):
    # pure-JAX reference mirroring the PyTorch module
    if x.ndim > 2:
        n, c = x.shape[0], x.shape[1]
        x = jnp.transpose(x.reshape(n, c, -1), (0, 2, 1)).reshape(-1, c)
    t = target.reshape(-1)
    logp = jax.nn.log_softmax(x.astype(jnp.float32), axis=1)
    logpt = jnp.take_along_axis(logp, t[:, None], axis=1)[:, 0]
    pt = jnp.exp(logpt)
    if alpha is not None:
        logpt = logpt * jnp.asarray(alpha, jnp.float32)[t]
    loss = -((1.0 - pt) ** gamma) * logpt
    return loss.mean() if size_average else loss.sum()


if __name__ == "__main__":
    key = jax.random.PRNGKey(0)
    kx, kt, kx2, kt2 = jax.random.split(key, 4)
    N, C, H, W = 2, 4, 16, 16
    x = jax.random.normal(kx, (N, C, H, W), dtype=jnp.float32)
    target = jax.random.randint(kt, (N, H, W), 0, C, dtype=jnp.int32)

    # default config (gamma=2, alpha=None, mean)
    out = focal_loss(x, target, gamma=2.0, alpha=None, size_average=True)
    out = jax.block_until_ready(out)
    ref = _focal_loss_ref(x, target, gamma=2.0, alpha=None, size_average=True)
    assert jnp.allclose(out, ref, rtol=1e-5, atol=1e-6), (out, ref)

    # alpha-weighted, sum-reduction path
    alpha = jnp.array([0.25, 0.75, 0.5, 1.0], dtype=jnp.float32)
    out_a = focal_loss(x, target, gamma=2.0, alpha=alpha, size_average=False)
    out_a = jax.block_until_ready(out_a)
    ref_a = _focal_loss_ref(x, target, gamma=2.0, alpha=alpha, size_average=False)
    assert jnp.allclose(out_a, ref_a, rtol=1e-5, atol=1e-5), (out_a, ref_a)

    # multi-tile path with a partial (masked) last tile (hw=144, tile=128)
    x2 = jax.random.normal(kx2, (2, 4, 12, 12), dtype=jnp.float32)
    t2 = jax.random.randint(kt2, (2, 12, 12), 0, 4, dtype=jnp.int32)
    out_m = focal_loss(x2, t2, gamma=2.0, alpha=None, size_average=True,
                       lane_tile=128)
    out_m = jax.block_until_ready(out_m)
    ref_m = _focal_loss_ref(x2, t2, gamma=2.0, alpha=None, size_average=True)
    assert jnp.allclose(out_m, ref_m, rtol=1e-5, atol=1e-6), (out_m, ref_m)

    print("KERNEL_OK")
</pallas_src>

<mosaic_0001>
module attributes {stable_mosaic.version = 11 : i64} {
  func.func @_focal_kernel(%arg0: i32, %arg1: i32, %arg2: memref<1x1x256xi32, #tpu.memory_space<vmem>>, %arg3: memref<1x4x256xf32, #tpu.memory_space<vmem>>, %arg4: memref<1x1x1x128xf32, #tpu.memory_space<vmem>>) attributes {dimension_semantics = [#tpu.dimension_semantics<parallel>, #tpu.dimension_semantics<parallel>], iteration_bounds = array<i64: 2, 1>, scalar_prefetch = 0 : i64, scratch_operands = 0 : i64, tpu.core_type = #tpu.core_type<tc>, window_params = [{transform_indices = @transform_0, window_bounds = array<i64: 1, 1, 256>}, {transform_indices = @transform_1, window_bounds = array<i64: 1, 4, 256>}, {transform_indices = @transform_2, window_bounds = array<i64: 1, 1, 1, 128>}]} {
    %c0 = arith.constant 0 : index
    %c0_0 = arith.constant 0 : index
    %c0_1 = arith.constant 0 : index
    %0 = vector.load %arg3[%c0, %c0_0, %c0_1] : memref<1x4x256xf32, #tpu.memory_space<vmem>>, vector<1x4x256xf32>
    %1 = vector.shape_cast %0 : vector<1x4x256xf32> to vector<4x256xf32>
    %c0_2 = arith.constant 0 : index
    %c0_3 = arith.constant 0 : index
    %c0_4 = arith.constant 0 : index
    %2 = vector.load %arg2[%c0_2, %c0_3, %c0_4] : memref<1x1x256xi32, #tpu.memory_space<vmem>>, vector<1x1x256xi32>
    %3 = vector.shape_cast %2 : vector<1x1x256xi32> to vector<1x256xi32>
    %cst = arith.constant dense<0xFF800000> : vector<256xf32>
    %4 = vector.multi_reduction <maximumf>, %1, %cst [0] : vector<4x256xf32> to vector<256xf32>
    %5 = vector.shape_cast %4 : vector<256xf32> to vector<1x256xf32>
    %6 = vector.broadcast %5 : vector<1x256xf32> to vector<4x256xf32>
    %7 = arith.subf %1, %6 : vector<4x256xf32>
    %8 = math.exp %7 : vector<4x256xf32>
    %cst_5 = arith.constant dense<0.000000e+00> : vector<256xf32>
    %9 = vector.multi_reduction <add>, %8, %cst_5 [0] : vector<4x256xf32> to vector<256xf32>
    %10 = vector.shape_cast %9 : vector<256xf32> to vector<1x256xf32>
    %11 = math.log %10 : vector<1x256xf32>
    %12 = tpu.iota {dimensions = array<i32: 0>} : vector<4x1xi32>
    %13 = vector.broadcast %12 : vector<4x1xi32> to vector<4x256xi32>
    %14 = vector.broadcast %3 : vector<1x256xi32> to vector<4x256xi32>
    %15 = arith.cmpi eq, %13, %14 : vector<4x256xi32>
    %cst_6 = arith.constant 0.000000e+00 : f32
    %16 = vector.broadcast %cst_6 : f32 to vector<4x256xf32>
    %17 = arith.select %15, %7, %16 : vector<4x256xi1>, vector<4x256xf32>
    %cst_7 = arith.constant dense<0.000000e+00> : vector<256xf32>
    %18 = vector.multi_reduction <add>, %17, %cst_7 [0] : vector<4x256xf32> to vector<256xf32>
    %19 = vector.shape_cast %18 : vector<256xf32> to vector<1x256xf32>
    %20 = arith.subf %19, %11 : vector<1x256xf32>
    %21 = math.exp %20 : vector<1x256xf32>
    %cst_8 = arith.constant 1.000000e+00 : f32
    %22 = vector.broadcast %cst_8 : f32 to vector<1x256xf32>
    %23 = arith.subf %22, %21 : vector<1x256xf32>
    %24 = arith.mulf %23, %23 : vector<1x256xf32>
    %cst_9 = arith.constant 0.000000e+00 : f32
    %25 = vector.broadcast %cst_9 : f32 to vector<1x256xf32>
    %26 = arith.subf %25, %24 : vector<1x256xf32>
    %27 = arith.mulf %26, %20 : vector<1x256xf32>
    %cst_10 = arith.constant dense<0.000000e+00> : vector<1xf32>
    %28 = vector.multi_reduction <add>, %27, %cst_10 [1] : vector<1x256xf32> to vector<1xf32>
    %29 = vector.shape_cast %28 : vector<1xf32> to vector<1x1xf32>
    %30 = vector.shape_cast %29 : vector<1x1xf32> to vector<1x1x1x1xf32>
    %31 = vector.shape_cast %30 : vector<1x1x1x1xf32> to vector<1x1x1x1xf32>
    %32 = vector.broadcast %31 : vector<1x1x1x1xf32> to vector<1x1x1x128xf32>
    %c0_11 = arith.constant 0 : index
    %c0_12 = arith.constant 0 : index
    %c0_13 = arith.constant 0 : index
    %c0_14 = arith.constant 0 : index
    %33 = vector.load %arg4[%c0_11, %c0_12, %c0_13, %c0_14] : memref<1x1x1x128xf32, #tpu.memory_space<vmem>>, vector<1x1x1x128xf32>
    tpu.vector_store %arg4[%c0_11, %c0_12, %c0_13, %c0_14], %32 {strides = array<i32>} : memref<1x1x1x128xf32, #tpu.memory_space<vmem>>, vector<1x1x1x128xf32>,
    return
  }
  func.func @transform_0(%arg0: i32, %arg1: i32) -> (i32, i32, i32) {
    %c0_i32 = arith.constant 0 : i32
    %c0_i32_0 = arith.constant 0 : i32
    return %arg0, %c0_i32, %arg1 : i32, i32, i32
  }
  func.func @transform_1(%arg0: i32, %arg1: i32) -> (i32, i32, i32) {
    %c0_i32 = arith.constant 0 : i32
    %c0_i32_0 = arith.constant 0 : i32
    return %arg0, %c0_i32, %arg1 : i32, i32, i32
  }
  func.func @transform_2(%arg0: i32, %arg1: i32) -> (i32, i32, i32, i32) {
    %c0_i32 = arith.constant 0 : i32
    %c0_i32_0 = arith.constant 0 : i32
    %c0_i32_1 = arith.constant 0 : i32
    return %arg0, %arg1, %c0_i32, %c0_i32_0 : i32, i32, i32, i32
  }
}

</mosaic_0001>

<bundles_post_ra>
// kernel: tpu_custom_call.1
= control target key start
LH: loop header
LB: loop body
LE: loop exit
PB: predicated region body
PF: predicated region fallthrough
CT: control target
= control target key end

     0   :  { %7 = vsyncpa [#allocation3], 0  ;;  %s872_s0 = inlined_call_operand.hbm [shape: s32[2,1,256], index: 0, kind: input, shape index: {}]   ;;  %s873_s1 = inlined_call_operand.hbm [shape: f32[2,4,256], index: 1, kind: input, shape index: {}]   ;;  %s874_s2 = inlined_call_operand.hbm [shape: f32[2,1,1,128], index: 2, kind: output, shape index: {}]  }
   0x1   :  { %9 = vsyncpa [#allocation3 + $0x1], 0 }
   0x2   :  { %10 = vsyncpa [#allocation6], 0 }
   0x3   :  { %12 = vsyncpa [#allocation6 + $0x1], 0 }
   0x4   :  { %13 = vsyncpa [#allocation4], 0 }
   0x5   :  { %15 = vsyncpa [#allocation4 + $0x1], 0  ;;  %s692_s9 = smov 0   ;;  %s694_s10 = smov 0  }
   0x6   :  { %s696_s11 = smov 0   ;;  %s698_s12 = smov 0  }
   0x7   :  { %s700_s13 = smov 0   ;;  %s702_s14 = smov 0  }
   0x8 LB: > { %s436_s15 = sadd.s32 4294967295, %s672_s14   ;;  %s437_s16 = sadd.s32 4294967294, %s672_s14   ;;  %s672_s14 = sphi %s702_s14, %s21_s14   ;;  %s668_s13 = sphi %s700_s13, %s886_s13   ;;  %s664_s12 = sphi %s698_s12, %s885_s12   ;;  %s660_s11 = sphi %s696_s11, %s884_s11   ;;  %s656_s10 = sphi %s694_s10, %s883_s10   ;;  %s652_s9 = sphi %s692_s9, %s882_s9  }
   0x9   : > { %s33_s17 = sadd.s32 1, %s668_s13  ;;  %s42_s18 = sadd.s32 1, %s660_s11 }
   0xa   : > { %p35_p0 = scmp.ge.s32.totalorder %s33_s17, 2  ;;  %p49_p1 = scmp.ne.s32.totalorder %s660_s11, %s656_s10 }
   0xb   : > { %p50_p2 = scmp.eq.s32.totalorder %s672_s14, 0  ;;  %p55_p3 = scmp.ne.s32.totalorder %s656_s10, %s652_s9 }
   0xc   : > { %s888_s17 = smov (%p35_p0, %s33_s17), 0  ;;  %p56_p5 = scmp.eq.s32.totalorder %s436_s15, 0 }
   0xd   : > { %p733_p4 = por %p50_p2, %p49_p1  ;;  %s37_s20 = ssub.s32 %s668_s13, %s888_s17 }
   0xe   : > { %p109_p6 = scmp.eq.s32.totalorder %s436_s15, 1  ;;  %p40_p7 = scmp.eq.s32.totalorder %s37_s20, 0 }
   0xf   : > { %p739_p8 = por %p56_p5, %p55_p3  ;;  %p115_p10 = scmp.eq.s32.totalorder %s437_s16, 1 }
  0x10   : > { %p743_p9 = por %p109_p6, %p49_p1  ;;  %p471_p13 = scmp.lt.s32.totalorder %s672_s14, 2 }
  0x11   : > { %s748_s23 = scalar_select %p40_p7, %s660_s11, %s42_s18  }
  0x12   : > { %p750_p11 = por %p115_p10, %p55_p3  ;;  %s757_s25 = sand.u32 1, %s660_s11  }
  0x13   : > { %s440_s26 = sshll.u32 %s757_s25, 1  ;;  %s452_s27 = sshll.u32 %s668_s13, 5 }
  0x14   : > { %s147_s30 = scalar_lea.hbm %s872_s0, %s452_s27  ;;  %s139_s3 = scalar_lea.vmem [#allocation2], %s440_s26 }
  0x15   : > { %s149_s4 = sshll.u32 %s139_s3, 4  ;;  %p766_p0 = pnand %p471_p13, %p733_p4  ;;  %s150_s4 = int_to_ptr.vmem [resolvable:$true] %s149_s4 }
  0x16   : > { %p446_p1 = scmp.ge.s32.totalorder %s672_s14, 1  ;;  %p175_p2 = scmp.lt.s32.totalorder %s672_s14, 3 }
  0x17   : > { %s136_s6 = scalar_lea.sflag [#allocation3], %s757_s25  ;;  %p534_p3 = pneg %p766_p0 }
  0x18   : > { %s545_s7 = scalar_lea.vmem %s150_s4, 32  ;;  %s674_s8 = smov [#allocation2]  }
  0x19   : > { %p546_p5 = scmp.ne.s32.totalorder %s150_s4, %s545_s7  ;;  %s550_s15 = sshll.u32 %s674_s8, 4  ;;  %s551_s15 = int_to_ptr.vmem [resolvable:$false] %s550_s15 }
  0x1a   : > { %s552_s16 = scalar_lea.vmem %s551_s15, 64  ;;  %p553_p4 = scmp.lt.s32.totalorder %s150_s4, %s551_s15 }
  0x1b   : > { %p548_p6 = pnand %p546_p5, %p534_p3  ;;  %p554_p10 = scmp.lt.s32.totalorder %s552_s16, %s545_s7 }
  0x1d   : > { %p549_p7 = pneg %p548_p6  ;;  %p555_p13 = por %p554_p10, %p553_p4 }
  0x1f   : > { %p556_p12 = pnand %p555_p13, %p549_p7 }
  0x21   : > { %559 = shalt.err (!%p556_p12)
}
  0x22   : > { %463 = dma.hbm_to_vmem [thread:$0]  (!%p766_p0), %s147_s30, 32, %s150_s4, %s136_s6  }
  0x23   : > { %p784_p5 = pnand %p446_p1, %p175_p2  ;;  %s443_s19 = sshll.u32 %s757_s25, 3 }
  0x24   : > { %s453_s20 = sshll.u32 %s668_s13, 7  ;;  %s160_s29 = scalar_lea.vmem [#allocation5], %s443_s19 }
  0x25   : > { %s168_s28 = scalar_lea.hbm %s873_s1, %s453_s20  ;;  %s170_s3 = sshll.u32 %s160_s29, 4  ;;  %s171_s3 = int_to_ptr.vmem [resolvable:$true] %s170_s3 }
  0x26   : > { %s157_s7 = scalar_lea.sflag [#allocation6], %s757_s25  ;;  %s573_s8 = scalar_lea.vmem %s171_s3, 128 }
  0x27   : > { %p574_p12 = scmp.ne.s32.totalorder %s171_s3, %s573_s8  ;;  %s675_s30 = smov [#allocation5]  }
  0x28   : > { %s578_s4 = sshll.u32 %s675_s30, 4  ;;  %s579_s4 = int_to_ptr.vmem [resolvable:$false] %s578_s4 }
  0x29   : > { %p576_p6 = pnand %p574_p12, %p534_p3  ;;  %s580_s6 = scalar_lea.vmem %s579_s4, 256 }
  0x2a   : > { %p581_p1 = scmp.lt.s32.totalorder %s171_s3, %s579_s4  ;;  %p582_p2 = scmp.lt.s32.totalorder %s580_s6, %s573_s8 }
  0x2b   : > { %p577_p7 = pneg %p576_p6 }
  0x2c   : > { %p583_p4 = por %p582_p2, %p581_p1 }
  0x2e   : > { %p584_p10 = pnand %p583_p4, %p577_p7 }
  0x30   : > { %587 = shalt.err (!%p584_p10)
}
  0x31   : > { %466 = dma.hbm_to_vmem [thread:$0]  (!%p766_p0), %s168_s28, 128, %s171_s3, %s157_s7  }
  0x32   : > { %179 = sbr.rel (%p784_p5) target bundleno = 305 (0x131), region = 28  ;;  %s802_s25 = sand.u32 (!%p784_p5), 1, %s656_s10  }
  0x33   : > { %s447_s15 = sshll.u32 (!%p784_p5), %s802_s25, 1  ;;  %s182_s16 = scalar_lea.sflag (!%p784_p5), [#allocation3], %s802_s25 }
  0x34   : > { %s806_s19 = scalar_lea.vmem (!%p784_p5), [#allocation2], %s447_s15 }
  0x37   : > { %639 = dma.done.wait (%p739_p8), %s182_s16, 32  }
  0x38   : > { %641 = vsyncadd (%p739_p8), %s182_s16, 4294967264  ;;  %s448_s5 = sshll.u32 %s802_s25, 3  ;;  %s191_s18 = scalar_lea.sflag [#allocation6], %s802_s25 }
  0x39   : > { %s194_s20 = scalar_lea.vmem [#allocation5], %s448_s5 }
  0x3a   : > { %643 = dma.done.wait (%p739_p8), %s191_s18, 128  }
  0x3b   : > { %645 = vsyncadd (%p739_p8), %s191_s18, 4294967168  ;;  %vm226_vm0 = vcmask 1043456   ;;  %v221_v0 = vld [vmem:[%s194_s20] sm:$0xff]  ;;  %v269_v17 = vlaneseq  ;;  %v222_v22 = vld [vmem:[%s806_s19] sm:$0x3]  ;;  %s218_s21 = scalar_lea.vmem [#allocation7], %s802_s25 }
  0x3c   : > { %v224_v1 = vcombine.high %v221_v0, %v221_v0  ;;  %v227_v2 = vsel %vm226_vm0, %v221_v0, -inf  ;;  %s332_s26 = sshll.u32 %s218_s21, 4  ;;  %s449_s27 = sshll.u32 %s664_s12, 4  ;;  %s827_s26 = int_to_ptr.vmem [resolvable:$true] %s332_s26 }
  0x3d   : > { %v228_v3 = vrot.slane %v227_v2, 4  ;;  %v270_v20 = vshrl.u32 %v269_v17, 7  ;;  %s330_s3 = scalar_lea.hbm %s874_s2, %s449_s27  ;;  %s319_s7 = scalar_lea.sflag [#allocation4], %s802_s25 }
  0x3e   : > { %v234_v4 = vsel %vm226_vm0, %v224_v1, -inf  ;;  %s588_s8 = scalar_lea.vmem %s827_s26, 16  ;;  %s676_s30 = smov [#allocation7]  }
  0x3f   : > { %v229_v5 = vmax.f32 %v227_v2, %v228_v3  ;;  %v235_v6 = vrot.slane %v234_v4, 4  ;;  %v273_v21 = vsub.s32 0, %v270_v20  ;;  %v277_v23 = vsub.s32 1, %v270_v20  ;;  %p589_p8 = scmp.ne.s32.totalorder %s827_s26, %s588_s8  ;;  %s592_s4 = sshll.u32 %s676_s30, 4  ;;  %s593_s4 = int_to_ptr.vmem [resolvable:$false] %s592_s4 }
  0x40   : > { %s594_s12 = scalar_lea.vmem %s593_s4, 32  ;;  %p595_p13 = scmp.lt.s32.totalorder %s827_s26, %s593_s4 }
  0x41   : > { %v230_v7 = vrot.slane %v229_v5, 2  ;;  %v236_v8 = vmax.f32 %v234_v4, %v235_v6  ;;  %v274_v24 = vrot.slane %v222_v22, %v273_v21  ;;  %v278_v25 = vrot.slane %v222_v22, %v277_v23  ;;  %p590_p0 = pnand %p589_p8, %p743_p9  ;;  %p596_p5 = scmp.lt.s32.totalorder %s594_s12, %s588_s8 }
  0x43   : > { %v231_v9 = vmax.f32 %v229_v5, %v230_v7  ;;  %v237_v10 = vrot.slane %v236_v8, 2  ;;  %vm279_vm1 = vcmp.eq.s32.totalorder %v270_v20, %v274_v24  ;;  %vm280_vm2 = vcmp.eq.s32.totalorder %v270_v20, %v278_v25  ;;  %p591_p3 = pneg %p590_p0  ;;  %p597_p12 = por %p596_p5, %p595_p13 }
  0x45   : > { %v232_v11 = vrot.slane %v231_v9, 1  ;;  %v238_v12 = vmax.f32 %v236_v8, %v237_v10  ;;  %p598_p6 = pnand %p597_p12, %p591_p3 }
  0x47   : > { %v233_v13 = vmax.f32 %v231_v9, %v232_v11  ;;  %v239_v14 = vrot.slane %v238_v12, 1 }
  0x49   : > { %v240_v15 = vmax.f32 %v238_v12, %v239_v14 }
  0x4b   : > { %v243_v16 = vcombine.low %v233_v13, %v240_v15 }
  0x4d   : > { %v245_v18 = vsub.f32 %v221_v0, %v243_v16 }
  0x4f   : > { %v246_v19 = vmul.f32 1.442695, %v245_v18  ;;  %v282_v26 = vcombine.high %v245_v18, %v245_v18  ;;  %v284_v28 = vsel %vm279_vm1, %v245_v18, 0.0 }
  0x50   : > { %v286_v34 = vsel %vm226_vm0, %v284_v28, 0.0 }
  0x51   : > { %522 = vpow2.f32 %v246_v19  ;;  %v285_v32 = vsel %vm280_vm2, %v282_v26, 0.0  ;;  %v287_v40 = vrot.slane %v286_v34, 4 }
  0x52   : > { %v293_v37 = vsel %vm226_vm0, %v285_v32, 0.0 }
  0x53   : > { %v294_v43 = vrot.slane %v293_v37, 4  ;;  %v288_v46 = vadd.f32 %v287_v40, %v286_v34 }
  0x55   : > { %v295_v49 = vadd.f32 %v294_v43, %v293_v37  ;;  %v289_v51 = vrot.slane %v288_v46, 2 }
  0x57   : > { %v296_v52 = vrot.slane %v295_v49, 2  ;;  %v290_v53 = vadd.f32 %v289_v51, %v288_v46 }
  0x59   : > { %v297_v54 = vadd.f32 %v296_v52, %v295_v49  ;;  %v291_v55 = vrot.slane %v290_v53, 1 }
  0x5b   : > { %v298_v56 = vrot.slane %v297_v54, 1  ;;  %v292_v57 = vadd.f32 %v291_v55, %v290_v53 }
  0x5d   : > { %v299_v60 = vadd.f32 %v298_v56, %v297_v54 }
  0x5e   : > { %v523_v27 = vpop.eup %522 }
  0x5f   : > { %v249_v29 = vcombine.high %v523_v27, %v523_v27  ;;  %v251_v30 = vsel %vm226_vm0, %v523_v27, 0.0 }
  0x60   : > { %v252_v31 = vrot.slane %v251_v30, 4 }
  0x61   : > { %v258_v33 = vsel %vm226_vm0, %v249_v29, 0.0 }
  0x62   : > { %v253_v35 = vadd.f32 %v252_v31, %v251_v30  ;;  %v259_v36 = vrot.slane %v258_v33, 4 }
  0x64   : > { %v254_v38 = vrot.slane %v253_v35, 2  ;;  %v260_v39 = vadd.f32 %v259_v36, %v258_v33 }
  0x66   : > { %v255_v41 = vadd.f32 %v254_v38, %v253_v35  ;;  %v261_v42 = vrot.slane %v260_v39, 2 }
  0x68   : > { %v256_v44 = vrot.slane %v255_v41, 1  ;;  %v262_v45 = vadd.f32 %v261_v42, %v260_v39 }
  0x6a   : > { %v257_v47 = vadd.f32 %v256_v44, %v255_v41  ;;  %v263_v48 = vrot.slane %v262_v45, 1 }
  0x6c   : > { %v264_v50 = vadd.f32 %v263_v48, %v262_v45  ;;  %524 = vlog2.f32 %v257_v47 }
  0x6e   : > { %526 = vlog2.f32 %v264_v50 }
  0x79   : > { %v525_v58 = vpop.eup %524 }
  0x7a   : > { %v266_v59 = vmul.f32 0.6931472, %v525_v58 }
  0x7b   : > { %v527_v61 = vpop.eup %526 }
  0x7c   : > { %v268_v62 = vmul.f32 0.6931472, %v527_v61  ;;  %v300_v63 = vsub.f32 %v292_v57, %v266_v59 }
  0x7e   : > { %v301_v0 = vsub.f32 %v299_v60, %v268_v62  ;;  %v302_v1 = vmul.f32 1.442695, %v300_v63 }
  0x80   : > { %528 = vpow2.f32 %v302_v1  ;;  %v304_v2 = vmul.f32 1.442695, %v301_v0 }
  0x82   : > { %530 = vpow2.f32 %v304_v2 }
  0x8d   : > { %v529_v3 = vpop.eup %528 }
  0x8e   : > { %v306_v4 = vsub.f32 1.0, %v529_v3 }
  0x8f   : > { %v531_v5 = vpop.eup %530 }
  0x90   : > { %v307_v6 = vsub.f32 1.0, %v531_v5  ;;  %v308_v7 = vmul.f32 %v306_v4, %v306_v4 }
  0x92   : > { %v309_v8 = vmul.f32 %v307_v6, %v307_v6  ;;  %v310_v9 = vsub.f32 0.0, %v308_v7 }
  0x94   : > { %v311_v10 = vsub.f32 0.0, %v309_v8  ;;  %v312_v11 = vmul.f32 %v310_v9, %v300_v63 }
  0x96   : > { %v313_v12 = vmul.f32 %v311_v10, %v301_v0 }
  0x98   : > { %v314_v13 = vadd.f32 %v313_v12, %v312_v11 }
  0x9a   : > { %315 = vadd.xlane.f32.xlu0 %v314_v13 }
 0x123   : > { %v316_v14 = vpop.xlane.xlu0 %315 }
 0x124   : > { %317 = vst [vmem:[%s218_s21] sm:$0x1] %v316_v14 }
 0x125   : > { %601 = shalt.err (!%p598_p6)
}
 0x126   : > { %s602_s6 = scalar_lea.hbm %s330_s3, 16  ;;  %s606_s16 = scalar_lea.hbm %s874_s2, 32 }
 0x127   : > { %p603_p7 = scmp.ne.s32.totalorder %s330_s3, %s602_s6  ;;  %p607_p4 = scmp.lt.s32.totalorder %s330_s3, %s874_s2 }
 0x128   : > { %p608_p10 = scmp.lt.s32.totalorder %s606_s16, %s602_s6 }
 0x129   : > { %p604_p1 = pnand %p603_p7, %p743_p9 }
 0x12a   : > { %p609_p8 = por %p608_p10, %p607_p4 }
 0x12b   : > { %p605_p2 = pneg %p604_p1 }
 0x12d   : > { %p610_p0 = pnand %p609_p8, %p605_p2 }
 0x12f   : > { %613 = shalt.err (!%p610_p0)
}
 0x130   : > { %458 = dma.vmem_to_hbm [thread:$0]  (%p743_p9), %s827_s26, 16, %s330_s3, %s319_s7  }
 0x131 PF: > { %s344_s18 = sand.u32 1, %s652_s9   ;;  %p881_p3 = scmp.ge.s32.totalorder %s672_s14, 2 }
 0x132   : > { %s345_s20 = scalar_lea.sflag [#allocation4], %s344_s18 }
 0x133   : > { %p468_p13 = pnand %p881_p3, %p750_p11 }
 0x135   : > { %p469_p5 = pneg %p468_p13 }
 0x137   : > { %647 = dma.done.wait (%p469_p5), %s345_s20, 16  }
 0x138   : > { %649 = vsyncadd (%p469_p5), %s345_s20, 4294967280  ;;  %s21_s14 = sadd.s32 1, %s672_s14   ;;  %s882_s9 = smov %s656_s10 }
 0x139   : > { %p18_p12 = scmp.ge.s32.totalorder %s21_s14, 4   ;;  %s883_s10 = smov %s660_s11 }
 0x13a   : > { %s884_s11 = smov %s748_s23  ;;  %s885_s12 = smov %s668_s13 }
 0x13b   : > { %s886_s13 = smov %s888_s17  ;;  %20 = sbr.rel (!%p18_p12) target bundleno = 8 (0x8), region = 86 }
 0x140   :  { %349 = vsyncpa [#allocation3], 1 }
 0x141   :  { %351 = vsyncpa [#allocation3 + $0x1], 1 }
 0x142   :  { %352 = vsyncpa [#allocation6], 1 }
 0x143   :  { %354 = vsyncpa [#allocation6 + $0x1], 1 }
 0x144   :  { %355 = vsyncpa [#allocation4], 1 }
 0x145   :  { %357 = vsyncpa [#allocation4 + $0x1], 1 }

</bundles_post_ra>
